<compile_context>
chip_gen: v5e
topology: v5e:2x2
jax: 0.10.0
libtpu: 0.0.40
codegen_flags: <defaults>
</compile_context>

<pallas_src>
import functools

import jax
import jax.numpy as jnp
from jax.experimental import pallas as pl
from jax.experimental.pallas import tpu as pltpu

_LANE = 128
_SUBLANE = 8


def _round_up(x, m):
    return ((x + m - 1) // m) * m


# ---------- pass 1: global average pool (per-(b,c) mean over spatial) ----------
def _pool_kernel(x_ref, mean_ref, *, inv_hw):
    # x_ref: (row_tile, hw_tile); mean_ref: (row_tile, 1), resident across HW axis.
    hw_idx = pl.program_id(1)

    @pl.when(hw_idx == 0)
    def _():
        mean_ref[...] = jnp.zeros_like(mean_ref)

    mean_ref[...] += jnp.sum(x_ref[...], axis=-1, keepdims=True)

    @pl.when(hw_idx == pl.num_programs(1) - 1)
    def _():
        # divide by the true H*W (padded lanes are zero, so sums are exact)
        mean_ref[...] = mean_ref[...] * inv_hw


# ---------- pass 2: tiny squeeze-excite MLP (Linear+Sigmoid, Linear+Sigmoid) ----
def _fc_kernel(y_ref, w1_ref, b1_ref, w2_ref, b2_ref, s_ref):
    y = y_ref[...]  # (B, C) f32
    h = jax.nn.sigmoid(
        jnp.dot(y, w1_ref[...], preferred_element_type=jnp.float32) + b1_ref[...])
    s = jax.nn.sigmoid(
        jnp.dot(h, w2_ref[...], preferred_element_type=jnp.float32) + b2_ref[...])
    s_ref[...] = s.astype(s_ref.dtype)


# ---------- pass 3: broadcast-scale x by the per-(b,c) gate ---------------------
def _scale_kernel(x_ref, s_ref, o_ref):
    # x_ref: (row_tile, hw_tile); s_ref: (row_tile, 1) broadcast over lanes.
    o_ref[...] = (x_ref[...] * s_ref[...]).astype(o_ref.dtype)


def channel_attention(x, w1, b1, w2, b2, *, hw_tile_target=1024, row_tile_target=512):
    """x: (B, C, H, W) float32. Weights stored as (in, out) so y @ W matches
    PyTorch's y @ W.T convention; biases kept 2D (1, N)."""
    B, C, H, W = x.shape
    HW = H * W
    R = B * C

    # lane/sublane-dense layout: rows = B*C on sublanes, spatial on lanes.
    x2 = x.reshape(R, HW)

    hw_tile = min(hw_tile_target, _round_up(HW, _LANE))
    HW_pad = _round_up(HW, hw_tile)
    row_tile = min(row_tile_target, _round_up(R, _SUBLANE))
    R_pad = _round_up(R, row_tile)

    if (R_pad, HW_pad) != (R, HW):
        x2 = jnp.pad(x2, ((0, R_pad - R), (0, HW_pad - HW)))

    n_rows = R_pad // row_tile
    n_hw = HW_pad // hw_tile

    vmem_limit = 32 * 1024 * 1024  # safe on v5e/v6e (128 MiB) and v7x (64 MiB)

    # ---- pass 1: pooled means, shape (R_pad, 1) ----
    pooled = pl.pallas_call(
        functools.partial(_pool_kernel, inv_hw=1.0 / float(HW)),
        out_shape=jax.ShapeDtypeStruct((R_pad, 1), jnp.float32),
        grid=(n_rows, n_hw),
        in_specs=[pl.BlockSpec((row_tile, hw_tile), lambda i, k: (i, k))],
        out_specs=pl.BlockSpec((row_tile, 1), lambda i, k: (i, 0)),
        compiler_params=pltpu.CompilerParams(
            dimension_semantics=("parallel", "arbitrary"),
            vmem_limit_bytes=vmem_limit,
        ),
    )(x2)

    # ---- pass 2: gate s = sigmoid(fc2(sigmoid(fc1(mean)))) on tiny (B, C) ----
    pooled_bc = pooled[:R, 0].reshape(B, C)  # trivial metadata-level reshape
    s_bc = pl.pallas_call(
        _fc_kernel,
        out_shape=jax.ShapeDtypeStruct((B, C), jnp.float32),
        in_specs=[pl.BlockSpec(memory_space=pltpu.MemorySpace.VMEM)] * 5,
        out_specs=pl.BlockSpec(memory_space=pltpu.MemorySpace.VMEM),
    )(pooled_bc, w1, b1, w2, b2)

    # ---- pass 3: out = x * s, streamed over (row, hw) tiles ----
    s_flat = s_bc.reshape(R, 1).astype(x.dtype)
    if R_pad != R:
        s_flat = jnp.pad(s_flat, ((0, R_pad - R), (0, 0)))

    out2 = pl.pallas_call(
        _scale_kernel,
        out_shape=jax.ShapeDtypeStruct((R_pad, HW_pad), x.dtype),
        grid=(n_rows, n_hw),
        in_specs=[
            pl.BlockSpec((row_tile, hw_tile), lambda i, k: (i, k)),
            pl.BlockSpec((row_tile, 1), lambda i, k: (i, 0)),
        ],
        out_specs=pl.BlockSpec((row_tile, hw_tile), lambda i, k: (i, k)),
        compiler_params=pltpu.CompilerParams(
            dimension_semantics=("parallel", "parallel"),
            vmem_limit_bytes=vmem_limit,
        ),
    )(x2, s_flat)

    if (R_pad, HW_pad) != (R, HW):
        out2 = out2[:R, :HW]
    return out2.reshape(B, C, H, W)


def reference(x, w1, b1, w2, b2):
    """Plain-JAX reference matching the PyTorch forward."""
    y = jnp.mean(x, axis=(2, 3))                      # AdaptiveAvgPool2d(1) -> (B, C)
    y = jax.nn.sigmoid(y @ w1 + b1)                   # Linear + Sigmoid
    y = jax.nn.sigmoid(y @ w2 + b2)                   # Linear + Sigmoid
    return x * y[:, :, None, None]


if __name__ == "__main__":
    # Shapes consistent with ChannelAttention(input_size=16, input_channel=4, alpha=4)
    B, C, H, W = 2, 4, 16, 16
    alpha = 4
    hidden = C // alpha  # = 1

    key = jax.random.PRNGKey(0)
    kx, kw1, kb1, kw2, kb2 = jax.random.split(key, 5)

    x = jax.random.normal(kx, (B, C, H, W), dtype=jnp.float32)
    # torch Linear weights are (out, in); stored here pre-transposed as (in, out).
    w1 = jax.random.normal(kw1, (C, hidden), dtype=jnp.float32) * 0.5
    b1 = jax.random.normal(kb1, (1, hidden), dtype=jnp.float32) * 0.1
    w2 = jax.random.normal(kw2, (hidden, C), dtype=jnp.float32) * 0.5
    b2 = jax.random.normal(kb2, (1, C), dtype=jnp.float32) * 0.1

    out = channel_attention(x, w1, b1, w2, b2)
    out = jax.block_until_ready(out)

    ref = reference(x, w1, b1[0], w2, b2[0])
    assert out.shape == (B, C, H, W)
    assert jnp.allclose(out, ref, atol=1e-5, rtol=1e-5), "mismatch vs reference"

    print("KERNEL_OK")
</pallas_src>

<mosaic_0001>
module attributes {stable_mosaic.version = 11 : i64} {
  func.func @_pool_kernel(%arg0: i32, %arg1: i32, %arg2: memref<8x256xf32, #tpu.memory_space<vmem>>, %arg3: memref<8x1xf32, #tpu.memory_space<vmem>>) attributes {dimension_semantics = [#tpu.dimension_semantics<parallel>, #tpu.dimension_semantics<arbitrary>], iteration_bounds = array<i64: 1, 1>, scalar_prefetch = 0 : i64, scratch_operands = 0 : i64, tpu.core_type = #tpu.core_type<tc>, window_params = [{transform_indices = @transform_0, window_bounds = array<i64: 8, 256>}, {transform_indices = @transform_1, window_bounds = array<i64: 8, 1>}]} {
    %c0_i32 = arith.constant 0 : i32
    %0 = arith.cmpi eq, %arg1, %c0_i32 : i32
    %1 = arith.extui %0 : i1 to i32
    %c0_i32_0 = arith.constant 0 : i32
    %2 = arith.cmpi ne, %1, %c0_i32_0 : i32
    scf.if %2 {
      %cst_8 = arith.constant 0.000000e+00 : f32
      %12 = vector.broadcast %cst_8 : f32 to vector<8x1xf32>
      %c0_9 = arith.constant 0 : index
      %c0_10 = arith.constant 0 : index
      %13 = vector.load %arg3[%c0_9, %c0_10] : memref<8x1xf32, #tpu.memory_space<vmem>>, vector<8x1xf32>
      tpu.vector_store %arg3[%c0_9, %c0_10], %12 {strides = array<i32>} : memref<8x1xf32, #tpu.memory_space<vmem>>, vector<8x1xf32>,
    } else {
    }
    %c0 = arith.constant 0 : index
    %c0_1 = arith.constant 0 : index
    %3 = vector.load %arg3[%c0, %c0_1] : memref<8x1xf32, #tpu.memory_space<vmem>>, vector<8x1xf32>
    %c0_2 = arith.constant 0 : index
    %c0_3 = arith.constant 0 : index
    %4 = vector.load %arg2[%c0_2, %c0_3] : memref<8x256xf32, #tpu.memory_space<vmem>>, vector<8x256xf32>
    %cst = arith.constant dense<0.000000e+00> : vector<8xf32>
    %5 = vector.multi_reduction <add>, %4, %cst [1] : vector<8x256xf32> to vector<8xf32>
    %6 = vector.shape_cast %5 : vector<8xf32> to vector<8x1xf32>
    %7 = arith.addf %3, %6 : vector<8x1xf32>
    %c0_4 = arith.constant 0 : index
    %c0_5 = arith.constant 0 : index
    %8 = vector.load %arg3[%c0_4, %c0_5] : memref<8x1xf32, #tpu.memory_space<vmem>>, vector<8x1xf32>
    tpu.vector_store %arg3[%c0_4, %c0_5], %7 {strides = array<i32>} : memref<8x1xf32, #tpu.memory_space<vmem>>, vector<8x1xf32>,
    %c0_i32_6 = arith.constant 0 : i32
    %9 = arith.cmpi eq, %arg1, %c0_i32_6 : i32
    %10 = arith.extui %9 : i1 to i32
    %c0_i32_7 = arith.constant 0 : i32
    %11 = arith.cmpi ne, %10, %c0_i32_7 : i32
    scf.if %11 {
      %c0_8 = arith.constant 0 : index
      %c0_9 = arith.constant 0 : index
      %12 = vector.load %arg3[%c0_8, %c0_9] : memref<8x1xf32, #tpu.memory_space<vmem>>, vector<8x1xf32>
      %cst_10 = arith.constant 3.906250e-03 : f32
      %13 = vector.broadcast %cst_10 : f32 to vector<8x1xf32>
      %14 = arith.mulf %12, %13 : vector<8x1xf32>
      %c0_11 = arith.constant 0 : index
      %c0_12 = arith.constant 0 : index
      %15 = vector.load %arg3[%c0_11, %c0_12] : memref<8x1xf32, #tpu.memory_space<vmem>>, vector<8x1xf32>
      tpu.vector_store %arg3[%c0_11, %c0_12], %14 {strides = array<i32>} : memref<8x1xf32, #tpu.memory_space<vmem>>, vector<8x1xf32>,
    } else {
    }
    return
  }
  func.func @transform_0(%arg0: i32, %arg1: i32) -> (i32, i32) {
    %c0_i32 = arith.constant 0 : i32
    return %arg0, %arg1 : i32, i32
  }
  func.func @transform_1(%arg0: i32, %arg1: i32) -> (i32, i32) {
    %c0_i32 = arith.constant 0 : i32
    %c0_i32_0 = arith.constant 0 : i32
    return %arg0, %c0_i32 : i32, i32
  }
}

</mosaic_0001>

<bundles_post_ra>
// kernel: tpu_custom_call.1
= control target key start
LH: loop header
LB: loop body
LE: loop exit
PB: predicated region body
PF: predicated region fallthrough
CT: control target
= control target key end

     0   :  { %6 = vsyncpa [#allocation3], 0  ;;  %s76_s9 = smov [#allocation2]   ;;  %s106_s0 = inlined_call_operand.hbm [shape: f32[8,256], index: 0, kind: input, shape index: {}]   ;;  %s107_s1 = inlined_call_operand.vmem [shape: f32[8,1], index: 1, kind: output, shape index: {}]  }
   0x1   :  { %s12_s8 = sshll.u32 %s106_s0, 4  ;;  %s14_s10 = sshll.u32 %s76_s9, 4  ;;  %s13_s8 = int_to_ptr.hbm [resolvable:$true] %s12_s8  ;;  %s15_s10 = int_to_ptr.vmem [resolvable:$true] %s14_s10 }
   0x2   :  { %17 = dma.hbm_to_vmem [thread:$0]  %s13_s8, 256, %s15_s10, [#allocation3]  }
   0x3   :  { %74 = dma.done.wait [#allocation3], 256  }
   0x4   :  { %75 = vsyncadd [#allocation3], 4294967040  ;;  %vm26_vm0 = vcmask 7168   ;;  %v77_v0 = vmov 0.0   ;;  %v29_v1 = vld [vmem:[#allocation2] sm:$0xff]  ;;  %v30_v2 = vld [vmem:[#allocation2 + $0x8] sm:$0xff] }
   0x5   :  { %27 = vst.msk [vmem:[%s107_s1] sm:$0xff] %vm26_vm0, %v77_v0  ;;  %v31_v3 = vadd.f32 %v30_v2, %v29_v1 }
   0x7   :  { %32 = vadd.xlane.f32.xlu0 %v31_v3 }
   0xc   :  { %v28_v4 = vld [vmem:[%s107_s1] sm:$0xff] }
  0x7a   :  { %v33_v5 = vpop.xlane.xlu0 %32 }
  0x7b   :  { %v34_v6 = vadd.f32 %v33_v5, %v28_v4 }
  0x7d   :  { %36 = vst.msk [vmem:[%s107_s1] sm:$0xff] %vm26_vm0, %v34_v6 }
  0x84   :  { %v40_v7 = vld [vmem:[%s107_s1] sm:$0xff] }
  0x85   :  { %v41_v8 = vmul.f32 0.00390625, %v40_v7 }
  0x87   :  { %42 = vst.msk [vmem:[%s107_s1] sm:$0xff] %vm26_vm0, %v41_v8 }
  0x88   :  { %47 = vsyncpa [#allocation3], 1 }

</bundles_post_ra>
